<compile_context>
chip_gen: v7x
topology: tpu7x:2x2x1
jax: 0.10.0
libtpu: 0.0.40
codegen_flags: <defaults>
</compile_context>

<pallas_src>
import functools
from typing import NamedTuple, Tuple

import jax
import jax.numpy as jnp
from jax.experimental import pallas as pl
from jax.experimental.pallas import tpu as pltpu


def _one_hot_categorical_kernel(logits_ref, logp_ref, probs_ref):
    """Row-wise log-softmax + softmax over the class (last / lane) axis."""
    x = logits_ref[...].astype(jnp.float32)
    m = jnp.max(x, axis=-1, keepdims=True)            # XLU lane reduce
    shifted = x - m                                    # VPU
    e = jnp.exp(shifted)                               # EUP
    s = jnp.sum(e, axis=-1, keepdims=True)             # XLU lane reduce
    # Normalized logits == log_probs (exactly what torch's OneHotCategorical
    # stores as .logits when constructed from raw logits).
    logp_ref[...] = (shifted - jnp.log(s)).astype(logp_ref.dtype)
    # s has shape (block_rows, 1); approx reciprocal goes to the otherwise
    # idle EUP slot, the broadcast multiply is the only full-block VPU work.
    probs_ref[...] = (e * pl.reciprocal(s, approx=True)).astype(probs_ref.dtype)


def _choose_block_rows(rows: int, num_classes: int, itemsize: int) -> int:
    """Bytes-targeted row tile for a mem-bound streaming kernel.

    Targets ~2 MiB of (f32-equivalent) input per block so per-grid-step
    overhead is amortized, while keeping 6 pipeline buffers ~= 12 MiB -- safe
    on v7x (64 MiB physical VMEM) and v5e (scoped limit raised below).
    """
    target_bytes = 2 << 20
    br = max(1, target_bytes // (itemsize * num_classes))
    # Keep >= 2 grid programs so dimension_semantics=("parallel",) actually
    # shards the grid across both TensorCores on v7x.
    if rows >= 16:
        br = min(br, rows // 2)
    br = min(br, rows)
    if rows >= 8:
        br = max(8, (br // 8) * 8)   # satisfy the (8, 128) sublane constraint
    return br


@functools.partial(jax.jit, static_argnames=("block_rows",))
def _normalize_logits_pallas(logits_2d: jax.Array, *, block_rows: int):
    rows, num_classes = logits_2d.shape
    itemsize = jnp.dtype(logits_2d.dtype).itemsize
    grid = (pl.cdiv(rows, block_rows),)
    # Lane axis is the full class extent (allowed even if not a 128-multiple,
    # since it equals the full array dim); only rows are tiled.
    spec = pl.BlockSpec((block_rows, num_classes), lambda i: (i, 0))

    cost = pl.CostEstimate(
        flops=6 * rows * num_classes,
        transcendentals=rows * num_classes + 2 * rows,
        bytes_accessed=3 * rows * num_classes * itemsize,
    )

    logp, probs = pl.pallas_call(
        _one_hot_categorical_kernel,
        out_shape=(
            jax.ShapeDtypeStruct((rows, num_classes), logits_2d.dtype),
            jax.ShapeDtypeStruct((rows, num_classes), logits_2d.dtype),
        ),
        grid_spec=pl.GridSpec(
            grid=grid,
            in_specs=[spec],
            out_specs=(spec, spec),
        ),
        compiler_params=pltpu.CompilerParams(
            dimension_semantics=("parallel",),
            # 6 pipeline buffers (~12 MiB at the 2 MiB tile) + f32 temporaries;
            # 32 MiB raises v5e's 16 MiB default scoped VMEM and leaves
            # headroom under v7x's 64 MiB physical VMEM.
            vmem_limit_bytes=32 << 20,
        ),
        cost_estimate=cost,
    )(logits_2d)
    return logp, probs


class RIndependentOneHotCategorical(NamedTuple):
    """Lightweight stand-in for the torch distribution returned by the layer:
    holds the normalized (reshaped) logits and probs plus event metadata.
    reinterpreted_batch_ndims == len(event_shape)."""
    event_shape: Tuple[int, ...]
    num_classes: int
    logits: jax.Array   # normalized log-probabilities, shape batch+event+[C]
    probs: jax.Array    # softmax probabilities,        shape batch+event+[C]


class RIndependentOneHotCategoricalLayer:
    def __init__(self, event_shape, num_classes):
        self.event_shape = list(event_shape)
        self.num_classes = int(num_classes)

    def __call__(self, logits: jax.Array) -> RIndependentOneHotCategorical:
        batch_shape = list(logits.shape[:-1])
        full_shape = tuple(batch_shape + self.event_shape + [self.num_classes])
        reshaped = logits.reshape(full_shape)

        # Flatten all leading dims into rows; classes stay on the lane axis.
        rows = 1
        for d in full_shape[:-1]:
            rows *= d
        flat = reshaped.reshape(rows, self.num_classes)

        # Kernel math is f32 regardless of input dtype; size the tile by the
        # f32-equivalent footprint so bf16 inputs don't blow up temporaries.
        itemsize = max(jnp.dtype(flat.dtype).itemsize, 4)
        block_rows = _choose_block_rows(rows, self.num_classes, itemsize)

        logp_flat, probs_flat = _normalize_logits_pallas(
            flat, block_rows=block_rows
        )

        # TODO(synk): probs could be made lazy (torch computes them on access);
        # keeping them fused here costs one extra output write per element.
        return RIndependentOneHotCategorical(
            event_shape=tuple(self.event_shape),
            num_classes=self.num_classes,
            logits=logp_flat.reshape(full_shape),
            probs=probs_flat.reshape(full_shape),
        )


if __name__ == "__main__":
    key = jax.random.PRNGKey(0)

    # Small shapes consistent with the module:
    #   batch=2, seq=8, event_shape=[4], num_classes=128
    #   -> layer input logits: (2, 8, 4 * 128) = (2, 8, 512)
    batch, seq = 2, 8
    event_shape = [4]
    num_classes = 128

    logits = jax.random.normal(
        key, (batch, seq, event_shape[0] * num_classes), dtype=jnp.float32
    )

    layer = RIndependentOneHotCategoricalLayer(event_shape, num_classes)
    dist = layer(logits)
    jax.block_until_ready(dist.logits)
    jax.block_until_ready(dist.probs)

    # Sanity checks against pure-JAX reference.
    ref = logits.reshape(batch, seq, event_shape[0], num_classes)
    ref_logp = jax.nn.log_softmax(ref, axis=-1)
    ref_probs = jax.nn.softmax(ref, axis=-1)
    assert dist.logits.shape == (batch, seq, event_shape[0], num_classes)
    assert dist.probs.shape == (batch, seq, event_shape[0], num_classes)
    # log-probs path has no approximate ops -> tight tolerance.
    assert jnp.allclose(dist.logits, ref_logp, atol=1e-5)
    # probs use EUP approx reciprocal (~2^-12 rel error) -> slightly looser.
    assert jnp.allclose(dist.probs, ref_probs, atol=2e-3, rtol=2e-3)
    assert jnp.allclose(jnp.sum(dist.probs, axis=-1), 1.0, atol=5e-3)

    print("KERNEL_OK")
</pallas_src>

<mosaic_0001>
module attributes {stable_mosaic.version = 11 : i64} {
  func.func @_one_hot_categorical_kernel(%arg0: i32, %arg1: memref<32x128xf32, #tpu.memory_space<vmem>>, %arg2: memref<32x128xf32, #tpu.memory_space<vmem>>, %arg3: memref<32x128xf32, #tpu.memory_space<vmem>>) attributes {dimension_semantics = [#tpu.dimension_semantics<parallel>], iteration_bounds = array<i64: 2>, scalar_prefetch = 0 : i64, scratch_operands = 0 : i64, tpu.core_type = #tpu.core_type<tc>, window_params = [{transform_indices = @transform_0, window_bounds = array<i64: 32, 128>}, {transform_indices = @transform_1, window_bounds = array<i64: 32, 128>}, {transform_indices = @transform_2, window_bounds = array<i64: 32, 128>}]} {
    %c0 = arith.constant 0 : index
    %c0_0 = arith.constant 0 : index
    %0 = vector.load %arg1[%c0, %c0_0] : memref<32x128xf32, #tpu.memory_space<vmem>>, vector<32x128xf32>
    %cst = arith.constant dense<0xFF800000> : vector<32xf32>
    %1 = vector.multi_reduction <maximumf>, %0, %cst [1] : vector<32x128xf32> to vector<32xf32>
    %2 = vector.shape_cast %1 : vector<32xf32> to vector<32x1xf32>
    %3 = vector.broadcast %2 : vector<32x1xf32> to vector<32x128xf32>
    %4 = arith.subf %0, %3 : vector<32x128xf32>
    %5 = math.exp %4 : vector<32x128xf32>
    %cst_1 = arith.constant dense<0.000000e+00> : vector<32xf32>
    %6 = vector.multi_reduction <add>, %5, %cst_1 [1] : vector<32x128xf32> to vector<32xf32>
    %7 = vector.shape_cast %6 : vector<32xf32> to vector<32x1xf32>
    %8 = math.log %7 : vector<32x1xf32>
    %9 = vector.broadcast %8 : vector<32x1xf32> to vector<32x128xf32>
    %10 = arith.subf %4, %9 : vector<32x128xf32>
    %c0_2 = arith.constant 0 : index
    %c0_3 = arith.constant 0 : index
    %11 = vector.load %arg2[%c0_2, %c0_3] : memref<32x128xf32, #tpu.memory_space<vmem>>, vector<32x128xf32>
    tpu.vector_store %arg2[%c0_2, %c0_3], %10 {strides = array<i32>} : memref<32x128xf32, #tpu.memory_space<vmem>>, vector<32x128xf32>,
    %12 = tpu.reciprocal %7 {approx = true} : vector<32x1xf32> -> vector<32x1xf32>
    %13 = vector.broadcast %12 : vector<32x1xf32> to vector<32x128xf32>
    %14 = arith.mulf %5, %13 : vector<32x128xf32>
    %c0_4 = arith.constant 0 : index
    %c0_5 = arith.constant 0 : index
    %15 = vector.load %arg3[%c0_4, %c0_5] : memref<32x128xf32, #tpu.memory_space<vmem>>, vector<32x128xf32>
    tpu.vector_store %arg3[%c0_4, %c0_5], %14 {strides = array<i32>} : memref<32x128xf32, #tpu.memory_space<vmem>>, vector<32x128xf32>,
    return
  }
  func.func @transform_0(%arg0: i32) -> (i32, i32) {
    %c0_i32 = arith.constant 0 : i32
    %c0_i32_0 = arith.constant 0 : i32
    return %arg0, %c0_i32 : i32, i32
  }
  func.func @transform_1(%arg0: i32) -> (i32, i32) {
    %c0_i32 = arith.constant 0 : i32
    %c0_i32_0 = arith.constant 0 : i32
    return %arg0, %c0_i32 : i32, i32
  }
  func.func @transform_2(%arg0: i32) -> (i32, i32) {
    %c0_i32 = arith.constant 0 : i32
    %c0_i32_0 = arith.constant 0 : i32
    return %arg0, %c0_i32 : i32, i32
  }
}

</mosaic_0001>

<bundles_post_ra>
// kernel: _normalize_logits_pallas.1
= control target key start
LH: loop header
LB: loop body
LE: loop exit
PB: predicated region body
PF: predicated region fallthrough
CT: control target
= control target key end

     0   :  { %8 = vsyncpa [#allocation3], 0  ;;  %s843_s0 = inlined_call_operand.hbm [shape: f32[64,128], index: 0, kind: input, shape index: {}]   ;;  %s844_s1 = inlined_call_operand.hbm [shape: f32[64,128], index: 1, kind: output, shape index: {0}]   ;;  %s845_s2 = inlined_call_operand.hbm [shape: f32[64,128], index: 2, kind: output, shape index: {1}]  }
   0x1   :  { %10 = vsyncpa [#allocation3 + $0x1], 0 }
   0x2   :  { %11 = vsyncpa [#allocation4], 0 }
   0x3   :  { %13 = vsyncpa [#allocation4 + $0x1], 0 }
   0x4   :  { %14 = vsyncpa [#allocation7], 0 }
   0x5   :  { %16 = vsyncpa [#allocation7 + $0x1], 0  ;;  %s628_s9 = smov 0   ;;  %s630_s10 = smov 0  }
   0x6   :  { %s632_s11 = smov 0   ;;  %s634_s12 = smov 0  }
   0x7 LB: > { %s649_s13 = sadd.s32 4294967295, %s604_s12   ;;  %s376_s14 = sadd.s32 4294967294, %s604_s12   ;;  %s604_s12 = sphi %s634_s12, %s858_s12   ;;  %s600_s11 = sphi %s632_s11, %s857_s11   ;;  %s596_s10 = sphi %s630_s10, %s856_s10   ;;  %s592_s9 = sphi %s628_s9, %s855_s9  }
   0x8   : > { %s653_s15 = sadd.s32 1, %s604_s12   ;;  %s29_s16 = sadd.s32 1, %s600_s11 }
   0x9   : > { %s26_s17 = ssub.s32 %s604_s12, %s653_s15  ;;  %p36_p0 = scmp.ne.s32.totalorder %s600_s11, %s596_s10 }
   0xa   : > { %p27_p1 = scmp.eq.s32.totalorder %s26_s17, 0  ;;  %p37_p2 = scmp.eq.s32.totalorder %s604_s12, 0 }
   0xb   : > { %p42_p3 = scmp.ne.s32.totalorder %s596_s10, %s592_s9  ;;  %p43_p4 = scmp.eq.s32.totalorder %s649_s13, 0 }
   0xc   : > { %s665_s18 = scalar_select %p27_p1, %s600_s11, %s29_s16  }
   0xd   : > { %p667_p5 = por %p37_p2, %p36_p0  ;;  %p671_p6 = por %p43_p4, %p42_p3 }
   0xe   : > { %p66_p7 = scmp.eq.s32.totalorder %s649_s13, 1  ;;  %p72_p8 = scmp.eq.s32.totalorder %s376_s14, 1 }
   0xf   : > { %p414_p10 = scmp.lt.s32.totalorder %s604_s12, 2  ;;  %s118_s23 = sand.u32 1, %s600_s11  }
  0x10   : > { %p678_p11 = por %p66_p7, %p36_p0  ;;  %p682_p12 = por %p72_p8, %p42_p3 }
  0x11   : > { %s394_s24 = sshll.u32 %s604_s12, 9  ;;  %s379_s25 = sshll.u32 %s118_s23, 5 }
  0x12   : > { %s849_s21 = scalar_select %p678_p11, 1, 0 }
  0x13   : > { %s850_s22 = scalar_select %p682_p12, 1, 0 }
  0x14   : > { %s691_s28 = scalar_lea.hbm %s843_s0, %s394_s24  ;;  %s122_s29 = scalar_lea.vmem [#allocation2], %s379_s25 }
  0x15   : > { %s129_s30 = sshll.u32 %s122_s29, 4  ;;  %p695_p13 = pnand %p414_p10, %p667_p5  ;;  %s699_s30 = int_to_ptr.vmem [resolvable:$true] %s129_s30 }
  0x16   : > { %s701_s4 = scalar_lea.sflag [#allocation3], %s118_s23  ;;  %s476_s5 = scalar_lea.hbm %s691_s28, 512 }
  0x17   : > { %p477_p0 = scmp.ne.s32.totalorder %s691_s28, %s476_s5  ;;  %p478_p1 = pneg %p695_p13 }
  0x18   : > { %s481_s8 = scalar_lea.hbm %s843_s0, 1024  ;;  %p482_p4 = scmp.lt.u32.totalorder %s691_s28, %s843_s0 }
  0x19   : > { %p479_p2 = pnand %p478_p1, %p477_p0  ;;  %p483_p5 = scmp.lt.u32.totalorder %s481_s8, %s476_s5 }
  0x1a   : > { %p485_p8 = scmp.lt.u32.totalorder %s476_s5, %s691_s28 }
  0x1b   : > { %p480_p3 = pneg %p479_p2  ;;  %p484_p7 = por %p483_p5, %p482_p4 }
  0x1d   : > { %p486_p10 = por %p485_p8, %p484_p7 }
  0x1f   : > { %p487_p9 = pnand %p486_p10, %p480_p3 }
  0x21   : > { %490 = shalt.err (!%p487_p9)
}
  0x22   : > { %s491_s17 = scalar_lea.vmem %s699_s30, 512  ;;  %s606_s19 = smov [#allocation2]  }
  0x23   : > { %p492_p0 = scmp.ne.s32.totalorder %s699_s30, %s491_s17  ;;  %s496_s23 = sshll.u32 %s606_s19, 4  ;;  %s497_s23 = int_to_ptr.vmem [resolvable:$false] %s496_s23 }
  0x24   : > { %s498_s24 = scalar_lea.vmem %s497_s23, 1024  ;;  %p499_p11 = scmp.lt.s32.totalorder %s699_s30, %s497_s23 }
  0x25   : > { %p494_p2 = pnand %p492_p0, %p478_p1  ;;  %p500_p4 = scmp.lt.s32.totalorder %s498_s24, %s491_s17 }
  0x27   : > { %p495_p12 = pneg %p494_p2  ;;  %p501_p5 = por %p500_p4, %p499_p11 }
  0x29   : > { %p502_p7 = pnand %p501_p5, %p495_p12 }
  0x2b   : > { %505 = shalt.err (!%p502_p7)
}
  0x2c   : > { %s607_s25 = smov 128   ;;  %s608_s26 = smov 8  }
  0x2d   : > { %406 = dma.hbm_to_vmem [thread:$0]  (!%p695_p13), %s691_s28, 512, %s699_s30, %s701_s4, %s607_s25, %s607_s25, %s608_s26  }
  0x2e   : > { %p382_p9 = scmp.ge.s32.totalorder %s604_s12, 1  ;;  %p137_p1 = scmp.lt.s32.totalorder %s604_s12, 3 }
  0x30   : > { %p138_p3 = pnand %p382_p9, %p137_p1 }
  0x31   : > { %s732_s27 = sand.u32 (!%p138_p3), 1, %s596_s10  }
  0x32   : > { %141 = sbr.rel (%p138_p3) target bundleno = 419 (0x1a3), region = 24  ;;  %s735_s29 = sshll.u32 (!%p138_p3), %s732_s27, 5 }
  0x33   : > { %s144_s5 = scalar_lea.sflag (!%p138_p3), [#allocation3], %s732_s27  ;;  %s147_s6 = scalar_lea.vmem (!%p138_p3), [#allocation2], %s735_s29 }
  0x39   : > { %579 = dma.done.wait (%p671_p6), %s144_s5, 512  }
  0x3a   : > { %581 = vsyncadd (%p671_p6), %s144_s5, 4294966784  ;;  %v176_v0 = vld [vmem:[%s147_s6] sm:$0xff]  ;;  %v178_v1 = vld [vmem:[%s147_s6 + $0x10] sm:$0xff]  ;;  %s747_s20 = scalar_lea.vmem [#allocation6], %s735_s29  ;;  %s165_s28 = scalar_lea.vmem [#allocation5], %s735_s29 }
  0x3b   : > { %180 = vmax.xlane.f32.xlu0 %v176_v0  ;;  %184 = vmax.xlane.f32.xlu1 %v178_v1  ;;  %v177_v2 = vld [vmem:[%s147_s6 + $0x8] sm:$0xff]  ;;  %v179_v3 = vld [vmem:[%s147_s6 + $0x18] sm:$0xff]  ;;  %s255_s30 = sshll.u32 %s165_s28, 4  ;;  %s395_s3 = sshll.u32 %s649_s13, 9  ;;  %s753_s30 = int_to_ptr.vmem [resolvable:$true] %s255_s30 }
  0x3c   : > { %s271_s4 = sshll.u32 %s747_s20, 4  ;;  %s761_s13 = scalar_lea.hbm %s845_s2, %s395_s3  ;;  %s763_s4 = int_to_ptr.vmem [resolvable:$true] %s271_s4 }
  0x3d   : > { %s768_s17 = scalar_lea.hbm %s844_s1, %s395_s3  ;;  %s242_s19 = scalar_lea.sflag [#allocation7], %s732_s27 }
  0x3e   : > { %s506_s23 = scalar_lea.vmem %s763_s4, 512  ;;  %p852_p11 = scmp.ne.s32.totalorder %s849_s21, 0 }
  0x3f   : > { %182 = vmax.xlane.f32.xlu0 %v177_v2  ;;  %186 = vmax.xlane.f32.xlu1 %v179_v3  ;;  %p507_p6 = scmp.ne.s32.totalorder %s763_s4, %s506_s23  ;;  %s609_s24 = smov [#allocation6]  }
  0x40   : > { %s510_s25 = sshll.u32 %s609_s24, 4  ;;  %s511_s25 = int_to_ptr.vmem [resolvable:$false] %s510_s25 }
  0x41   : > { %p508_p12 = pnand %p507_p6, %p852_p11  ;;  %s512_s26 = scalar_lea.vmem %s511_s25, 1024 }
  0x42   : > { %p513_p8 = scmp.lt.s32.totalorder %s763_s4, %s511_s25  ;;  %p514_p10 = scmp.lt.s32.totalorder %s512_s26, %s506_s23 }
  0x43   : > { %p509_p13 = pneg %p508_p12 }
  0x44   : > { %p515_p0 = por %p514_p10, %p513_p8 }
  0x46   : > { %p516_p2 = pnand %p515_p0, %p509_p13 }
  0xc8   : > { %v181_v4 = vpop.xlane.xlu0 %180  ;;  %v185_v5 = vpop.xlane.xlu1 %184 }
  0xc9   : > { %v188_v6 = vsub.f32 %v176_v0, %v181_v4  ;;  %v743_v7 = vsub.f32 %v178_v1, %v185_v5 }
  0xcb   : > { %v192_v8 = vmul.f32 1.442695, %v188_v6  ;;  %v196_v9 = vmul.f32 1.442695, %v743_v7 }
  0xcc   : > { %v183_v10 = vpop.xlane.xlu0 %182  ;;  %v187_v11 = vpop.xlane.xlu1 %186 }
  0xcd   : > { %452 = vpow2.f32 %v192_v8  ;;  %v189_v12 = vsub.f32 %v177_v2, %v183_v10  ;;  %v191_v13 = vsub.f32 %v179_v3, %v187_v11 }
  0xce   : > { %454 = vpow2.f32 %v196_v9 }
  0xcf   : > { %v194_v14 = vmul.f32 1.442695, %v189_v12  ;;  %v198_v15 = vmul.f32 1.442695, %v191_v13 }
  0xd1   : > { %456 = vpow2.f32 %v194_v14 }
  0xd2   : > { %458 = vpow2.f32 %v198_v15 }
  0xd7   : > { %v453_v16 = vpop.eup %452 }
  0xd8   : > { %200 = vadd.xlane.f32.xlu0 %v453_v16  ;;  %v455_v17 = vpop.eup %454 }
  0xdb   : > { %v457_v18 = vpop.eup %456 }
  0xdc   : > { %204 = vadd.xlane.f32.xlu0 %v455_v17  ;;  %202 = vadd.xlane.f32.xlu1 %v457_v18  ;;  %v459_v19 = vpop.eup %458 }
  0xe0   : > { %206 = vadd.xlane.f32.xlu1 %v459_v19 }
 0x165   : > { %v201_v20 = vpop.xlane.xlu0 %200 }
 0x166   : > { %460 = vlog2.f32 %v201_v20 }
 0x167   : > { %462 = vrcp.f32 %v201_v20 }
 0x169   : > { %v203_v21 = vpop.xlane.xlu1 %202  ;;  %v205_v22 = vpop.xlane.xlu0 %204 }
 0x16a   : > { %464 = vlog2.f32 %v203_v21 }
 0x16b   : > { %466 = vrcp.f32 %v203_v21 }
 0x16c   : > { %468 = vlog2.f32 %v205_v22 }
 0x16d   : > { %470 = vrcp.f32 %v205_v22  ;;  %v207_v23 = vpop.xlane.xlu1 %206 }
 0x16e   : > { %472 = vlog2.f32 %v207_v23 }
 0x16f   : > { %474 = vrcp.f32 %v207_v23 }
 0x170   : > { %v461_v24 = vpop.eup %460 }
 0x171   : > { %v463_v25 = vpop.eup %462  ;;  %v209_v26 = vmul.f32 0.6931472, %v461_v24 }
 0x172   : > { %v228_v27 = vmul.f32 %v463_v25, %v453_v16 }
 0x173   : > { %v216_v28 = vsub.f32 %v188_v6, %v209_v26 }
 0x174   : > { %v465_v29 = vpop.eup %464  ;;  %232 = vst [vmem:[%s747_s20] sm:$0xff] %v228_v27 }
 0x175   : > { %v467_v30 = vpop.eup %466  ;;  %220 = vst [vmem:[%s165_s28] sm:$0xff] %v216_v28  ;;  %v211_v31 = vmul.f32 0.6931472, %v465_v29 }
 0x176   : > { %v469_v32 = vpop.eup %468  ;;  %v229_v33 = vmul.f32 %v467_v30, %v457_v18 }
 0x177   : > { %v471_v34 = vpop.eup %470  ;;  %v217_v35 = vsub.f32 %v189_v12, %v211_v31  ;;  %v213_v36 = vmul.f32 0.6931472, %v469_v32 }
 0x178   : > { %v473_v37 = vpop.eup %472  ;;  %233 = vst [vmem:[%s747_s20 + $0x8] sm:$0xff] %v229_v33  ;;  %v230_v38 = vmul.f32 %v471_v34, %v455_v17 }
 0x179   : > { %v475_v39 = vpop.eup %474  ;;  %221 = vst [vmem:[%s165_s28 + $0x8] sm:$0xff] %v217_v35  ;;  %v218_v40 = vsub.f32 %v743_v7, %v213_v36  ;;  %v215_v41 = vmul.f32 0.6931472, %v473_v37 }
 0x17a   : > { %234 = vst [vmem:[%s747_s20 + $0x10] sm:$0xff] %v230_v38  ;;  %v231_v42 = vmul.f32 %v475_v39, %v459_v19 }
 0x17b   : > { %222 = vst [vmem:[%s165_s28 + $0x10] sm:$0xff] %v218_v40  ;;  %v219_v43 = vsub.f32 %v191_v13, %v215_v41 }
 0x17c   : > { %235 = vst [vmem:[%s747_s20 + $0x18] sm:$0xff] %v231_v42 }
 0x17d   : > { %223 = vst [vmem:[%s165_s28 + $0x18] sm:$0xff] %v219_v43 }
 0x17e   : > { %519 = shalt.err (!%p516_p2)
}
 0x17f   : > { %s520_s29 = scalar_lea.hbm %s761_s13, 512  ;;  %s524_s20 = scalar_lea.hbm %s845_s2, 1024 }
 0x180   : > { %p521_p4 = scmp.ne.s32.totalorder %s761_s13, %s520_s29  ;;  %p525_p9 = scmp.lt.u32.totalorder %s761_s13, %s845_s2 }
 0x181   : > { %p526_p1 = scmp.lt.u32.totalorder %s524_s20, %s520_s29  ;;  %p528_p6 = scmp.lt.u32.totalorder %s520_s29, %s761_s13 }
 0x182   : > { %p522_p5 = pnand %p521_p4, %p852_p11 }
 0x183   : > { %p527_p3 = por %p526_p1, %p525_p9 }
 0x184   : > { %p523_p7 = pneg %p522_p5 }
 0x185   : > { %p529_p12 = por %p528_p6, %p527_p3 }
 0x187   : > { %p530_p13 = pnand %p529_p12, %p523_p7 }
 0x189   : > { %533 = shalt.err (!%p530_p13)
}
 0x18a   : > { %s610_s7 = smov 128   ;;  %s611_s8 = smov 8  }
 0x18b   : > { %400 = dma.vmem_to_hbm [thread:$0]  (%p852_p11), %s763_s4, 512, %s761_s13, %s242_s19, %s610_s7, %s610_s7, %s611_s8  }
 0x18c   : > { %s237_s14 = scalar_lea.sflag [#allocation4], %s732_s27  ;;  %s534_s16 = scalar_lea.vmem %s753_s30, 512 }
 0x18d   : > { %p535_p8 = scmp.ne.s32.totalorder %s753_s30, %s534_s16  ;;  %s612_s23 = smov [#allocation5]  }
 0x18e   : > { %s538_s24 = sshll.u32 %s612_s23, 4  ;;  %s539_s24 = int_to_ptr.vmem [resolvable:$false] %s538_s24 }
 0x18f   : > { %p536_p10 = pnand %p535_p8, %p852_p11  ;;  %s540_s25 = scalar_lea.vmem %s539_s24, 1024 }
 0x190   : > { %p541_p2 = scmp.lt.s32.totalorder %s753_s30, %s539_s24  ;;  %p542_p4 = scmp.lt.s32.totalorder %s540_s25, %s534_s16 }
 0x191   : > { %p537_p0 = pneg %p536_p10 }
 0x192   : > { %p543_p5 = por %p542_p4, %p541_p2 }
 0x194   : > { %p544_p7 = pnand %p543_p5, %p537_p0 }
 0x196   : > { %547 = shalt.err (!%p544_p7)
}
 0x197   : > { %s548_s4 = scalar_lea.hbm %s768_s17, 512  ;;  %s552_s26 = scalar_lea.hbm %s844_s1, 1024 }
 0x198   : > { %p549_p9 = scmp.ne.s32.totalorder %s768_s17, %s548_s4  ;;  %p553_p6 = scmp.lt.u32.totalorder %s768_s17, %s844_s1 }
 0x199   : > { %p554_p12 = scmp.lt.u32.totalorder %s552_s26, %s548_s4  ;;  %p556_p8 = scmp.lt.u32.totalorder %s548_s4, %s768_s17 }
 0x19a   : > { %p550_p1 = pnand %p549_p9, %p852_p11 }
 0x19b   : > { %p555_p13 = por %p554_p12, %p553_p6 }
 0x19c   : > { %p551_p3 = pneg %p550_p1 }
 0x19d   : > { %p557_p10 = por %p556_p8, %p555_p13 }
 0x19f   : > { %p558_p0 = pnand %p557_p10, %p551_p3 }
 0x1a1   : > { %561 = shalt.err (!%p558_p0)
}
 0x1a2   : > { %399 = dma.vmem_to_hbm [thread:$0]  (%p852_p11), %s753_s30, 512, %s768_s17, %s237_s14, %s610_s7, %s610_s7, %s611_s8  }
 0x1a3 PF: > { %s286_s6 = sand.u32 1, %s592_s9   ;;  %p853_p2 = scmp.ne.s32.totalorder %s850_s22, 0 }
 0x1a4   : > { %p854_p4 = scmp.ge.s32.totalorder %s604_s12, 2  ;;  %s287_s20 = scalar_lea.sflag [#allocation4], %s286_s6 }
 0x1a6   : > { %p408_p5 = pnand %p854_p4, %p853_p2 }
 0x1a8   : > { %583 = dma.done.wait (!%p408_p5), %s287_s20, 512  }
 0x1a9   : > { %585 = vsyncadd (!%p408_p5), %s287_s20, 4294966784  ;;  %s296_s21 = scalar_lea.sflag [#allocation7], %s286_s6 }
 0x1aa   : > { %587 = dma.done.wait (!%p408_p5), %s296_s21, 512  }
 0x1ab   : > { %589 = vsyncadd (!%p408_p5), %s296_s21, 4294966784  ;;  %p19_p11 = scmp.ge.s32.totalorder %s653_s15, 4   ;;  %s855_s9 = smov %s596_s10 }
 0x1ac   : > { %s856_s10 = smov %s600_s11  ;;  %s857_s11 = smov %s665_s18 }
 0x1ad   : > { %s858_s12 = smov %s653_s15  ;;  %21 = sbr.rel (!%p19_p11) target bundleno = 7 (0x7), region = 86 }
 0x1b4   :  { %301 = vsyncpa [#allocation3], 1 }
 0x1b5   :  { %303 = vsyncpa [#allocation3 + $0x1], 1 }
 0x1b6   :  { %304 = vsyncpa [#allocation4], 1 }
 0x1b7   :  { %306 = vsyncpa [#allocation4 + $0x1], 1 }
 0x1b8   :  { %307 = vsyncpa [#allocation7], 1 }
 0x1b9   :  { %309 = vsyncpa [#allocation7 + $0x1], 1 }

</bundles_post_ra>
